<compile_context>
chip_gen: v5e
topology: v5e:2x2
jax: 0.10.0
libtpu: 0.0.40
codegen_flags: <defaults>
</compile_context>

<pallas_src>
import functools

import jax
import jax.numpy as jnp
from jax.experimental import pallas as pl
from jax.experimental.pallas import tpu as pltpu


def _round_up(a, m):
    return ((a + m - 1) // m) * m


def concept_linear_kernel(x_ref, c_ref, w1_ref, b1_ref, wb1_ref, bb1_ref,
                          w2s_ref, b2_ref, bb2_ref, out_ref, *, inv_c):
    n_c, tb, e_pad = x_ref.shape
    cdt = x_ref.dtype

    w1 = w1_ref[...]                       # (E_pad, E_pad) cdt
    b1 = b1_ref[...]                       # (1, E_pad)     f32
    c2 = c_ref[...]                        # (tb, C)        f32

    # First layer + concept weighting, accumulated per concept (static unrolled
    # loop; C is small).  Avoids materializing (C, TB, E) f32 temporaries and
    # keeps each dot at TB MXU rows with W1 resident as the RHS.
    hc = jnp.zeros((tb, e_pad), jnp.float32)      # sum_c c_c * LeakyReLU(x_c @ W1 + b1)
    xsum = jnp.zeros((tb, e_pad), jnp.float32)    # sum_c x_c (for the concept mean)
    for ci in range(n_c):
        x_ci = x_ref[ci]                           # (tb, E_pad) cdt
        h = jnp.dot(x_ci, w1, preferred_element_type=jnp.float32) + b1
        h = jnp.maximum(h, 0.01 * h)               # LeakyReLU(0.01), slope < 1
        hc = hc + c2[:, ci:ci + 1] * h
        xsum = xsum + x_ci.astype(jnp.float32)
    csum = jnp.sum(c2, axis=1, keepdims=True)      # (tb, 1)

    # Bias path: concept mean -> Linear -> LeakyReLU.
    xm = (xsum * inv_c).astype(cdt)
    hb = jnp.dot(xm, wb1_ref[...], preferred_element_type=jnp.float32) + bb1_ref[...]
    hb = jnp.maximum(hb, 0.01 * hb)

    # Fused second layer: exact rewrite
    #   logits + bias_attn = [hc | hb] @ [W2; Wb2] + sum(c)*b2 + bb2
    # -> a single MXU dot with contraction depth 2*E_pad.
    hcat = jnp.concatenate([hc.astype(cdt), hb.astype(cdt)], axis=1)   # (tb, 2*E_pad)
    out = jnp.dot(hcat, w2s_ref[...], preferred_element_type=jnp.float32)
    out = out + csum * b2_ref[...] + bb2_ref[...]
    out_ref[...] = out.astype(out_ref.dtype)       # lane-dense (tb, n_pad) store


def _chip_budget():
    """(tb_target, vmem_limit_bytes, is_v7x), keyed off the VMEM capacity."""
    vmem_cap = 128 * 1024 * 1024
    try:
        info = pltpu.get_tpu_info()
        vmem_cap = int(getattr(info, "vmem_capacity_bytes", vmem_cap))
    except Exception:
        pass
    if vmem_cap <= 64 * 1024 * 1024:
        # v7x: 64 MiB physical VMEM per TensorCore -> tighter limit, smaller tiles.
        return 256, 48 * 1024 * 1024, True
    # v5e / v6e: 128 MiB VMEM -> bigger tiles, generous scoped limit.
    return 512, 96 * 1024 * 1024, False


def _vmem_estimate(tb, n_c, e_pad, n_pad, isz):
    act = 2 * n_c * tb * e_pad * isz       # x block, double-buffered
    act += 2 * tb * 128 * 4                # c block (lane-padded), double-buffered
    act += 2 * tb * n_pad * 4              # out block, double-buffered
    wts = 2 * 2 * e_pad * e_pad * isz      # w1 + wb1, double-buffered
    wts += 2 * 2 * e_pad * n_pad * isz     # stacked w2s
    wts += 6 * 8 * max(e_pad, n_pad) * 4   # biases (sublane-padded), generous
    tmp = 4 * tb * e_pad * 4               # hc, xsum, h, hb (f32)
    tmp += tb * 2 * e_pad * isz            # hcat
    tmp += 2 * tb * n_pad * 4              # out f32 temporary + slack
    return act + wts + tmp


@functools.partial(jax.jit, static_argnames=("use_bf16",))
def concept_linear_forward(x, c, params, *, use_bf16=True):
    """x: (B, C, E), c: (B, C) -> (B, N) float32 (unbound modality, bias=True)."""
    B, C, E = x.shape
    N = params["w2"].shape[1]
    # Production path: bf16 MXU operands + f32 accumulation.  use_bf16=False is
    # test-only (f32 MXU operands cost multiple passes on every TPU generation).
    cdt = jnp.bfloat16 if use_bf16 else jnp.float32
    isz = 2 if use_bf16 else 4

    e_pad = _round_up(E, 128)              # MXU-aligned contraction/lane dim
    n_pad = _round_up(max(N, 128), 128)    # lane-dense output width

    # Batch tile: generation-aware target, capped by a VMEM estimate and by B;
    # guarantee >= 2 grid steps on v7x (two TensorCores) when the batch allows.
    tb_target, vmem_limit, is_v7x = _chip_budget()
    tb = tb_target
    while tb > 16 and _vmem_estimate(tb, C, e_pad, n_pad, isz) > int(0.6 * vmem_limit):
        tb //= 2
    tb = min(tb, _round_up(B, 16))
    if is_v7x and B >= 32 and _round_up(B, tb) // tb < 2:
        tb = max(16, (tb // 2 // 16) * 16)
    b_pad = _round_up(B, tb)

    # Concept-major, zero-padded activations (fused pad+transpose+cast under jit).
    x_cm = jnp.zeros((C, b_pad, e_pad), cdt).at[:, :B, :E].set(
        jnp.transpose(x, (1, 0, 2)).astype(cdt))
    # Concept scores stay batch-major: a (tb, C) block is one contiguous DMA per step.
    c_bm = jnp.zeros((b_pad, C), jnp.float32).at[:B].set(c.astype(jnp.float32))

    # Zero-padded weights; matmul operands in cdt, biases in f32.
    w1p = jnp.zeros((e_pad, e_pad), cdt).at[:E, :E].set(params["w1"].astype(cdt))
    wb1p = jnp.zeros((e_pad, e_pad), cdt).at[:E, :E].set(params["wb1"].astype(cdt))
    b1p = jnp.zeros((1, e_pad), jnp.float32).at[:, :E].set(params["b1"].astype(jnp.float32))
    bb1p = jnp.zeros((1, e_pad), jnp.float32).at[:, :E].set(params["bb1"].astype(jnp.float32))
    # Stacked second-layer weight [W2; Wb2] (one DMA, one fused dot), lane-padded.
    w2s = jnp.zeros((2 * e_pad, n_pad), cdt)
    w2s = w2s.at[:E, :N].set(params["w2"].astype(cdt))
    w2s = w2s.at[e_pad:e_pad + E, :N].set(params["wb2"].astype(cdt))
    b2p = jnp.zeros((1, n_pad), jnp.float32).at[:, :N].set(params["b2"].astype(jnp.float32))
    bb2p = jnp.zeros((1, n_pad), jnp.float32).at[:, :N].set(params["bb2"].astype(jnp.float32))

    const = lambda i: (0, 0)               # weights/biases: same block every step

    out = pl.pallas_call(
        functools.partial(concept_linear_kernel, inv_c=1.0 / C),
        out_shape=jax.ShapeDtypeStruct((b_pad, n_pad), jnp.float32),
        grid_spec=pltpu.PrefetchScalarGridSpec(
            num_scalar_prefetch=0,
            grid=(b_pad // tb,),
            in_specs=[
                pl.BlockSpec((C, tb, e_pad), lambda i: (0, i, 0)),   # x, concept-major
                pl.BlockSpec((tb, C), lambda i: (i, 0)),             # c, batch-major
                pl.BlockSpec((e_pad, e_pad), const),                 # w1
                pl.BlockSpec((1, e_pad), const),                     # b1
                pl.BlockSpec((e_pad, e_pad), const),                 # wb1
                pl.BlockSpec((1, e_pad), const),                     # bb1
                pl.BlockSpec((2 * e_pad, n_pad), const),             # [w2; wb2]
                pl.BlockSpec((1, n_pad), const),                     # b2
                pl.BlockSpec((1, n_pad), const),                     # bb2
            ],
            out_specs=pl.BlockSpec((tb, n_pad), lambda i: (i, 0)),
        ),
        compiler_params=pltpu.CompilerParams(
            dimension_semantics=("parallel",),          # megacore / v7x 2-TC sharding
            vmem_limit_bytes=vmem_limit,                # generation-aware scoped VMEM
        ),
    )(x_cm, c_bm, w1p, b1p, wb1p, bb1p, w2s, b2p, bb2p)

    return out[:B, :N]


def init_params(key, emb_size, n_classes):
    """PyTorch nn.Linear-style uniform(-1/sqrt(fan_in), 1/sqrt(fan_in)) init, deterministic."""
    ks = jax.random.split(key, 8)

    def lin(kw, kb, fan_in, fan_out):
        bound = 1.0 / (fan_in ** 0.5)
        w = jax.random.uniform(kw, (fan_in, fan_out), jnp.float32, -bound, bound)
        b = jax.random.uniform(kb, (1, fan_out), jnp.float32, -bound, bound)
        return w, b

    w1, b1 = lin(ks[0], ks[1], emb_size, emb_size)
    w2, b2 = lin(ks[2], ks[3], emb_size, n_classes)
    wb1, bb1 = lin(ks[4], ks[5], emb_size, emb_size)
    wb2, bb2 = lin(ks[6], ks[7], emb_size, n_classes)
    return dict(w1=w1, b1=b1, w2=w2, b2=b2, wb1=wb1, bb1=bb1, wb2=wb2, bb2=bb2)


def reference_forward(x, c, p):
    """Pure-JAX f32 reference mirroring the PyTorch forward (unbound modality, bias=True)."""
    h = x @ p["w1"] + p["b1"]
    h = jnp.where(h > 0, h, 0.01 * h)
    wa = h @ p["w2"] + p["b2"]                                 # (B, C, N)
    logits = jnp.sum(c[:, :, None] * wa, axis=1)               # (B, N)
    xm = jnp.mean(x, axis=1)                                   # (B, E)
    hb = xm @ p["wb1"] + p["bb1"]
    hb = jnp.where(hb > 0, hb, 0.01 * hb)
    ba = hb @ p["wb2"] + p["bb2"]                              # (B, N)
    return logits + ba


if __name__ == "__main__":
    B, C, E, N = 2, 4, 32, 8   # batch, n_concepts, emb_size, n_classes

    key = jax.random.PRNGKey(0)
    kx, kc, kp = jax.random.split(key, 3)
    x = jax.random.normal(kx, (B, C, E), jnp.float32)
    c = jax.nn.sigmoid(jax.random.normal(kc, (B, C), jnp.float32))  # concept scores in (0,1)
    params = init_params(kp, E, N)

    ref = reference_forward(x, c, params)

    # bf16 matmul operands (f32 accumulation): relaxed tolerance vs the f32 reference.
    out = jax.block_until_ready(concept_linear_forward(x, c, params, use_bf16=True))
    assert out.shape == (B, N)
    assert jnp.allclose(out, ref, atol=5e-2, rtol=5e-2), "mismatch vs reference (bf16)"

    # f32 path (test only) checks the algebraic rewrite is exact up to reassociation.
    out_f32 = jax.block_until_ready(concept_linear_forward(x, c, params, use_bf16=False))
    assert jnp.allclose(out_f32, ref, atol=1e-3, rtol=1e-3), "mismatch vs reference (f32)"

    print("KERNEL_OK")
</pallas_src>

<mosaic_0001>
module attributes {stable_mosaic.version = 11 : i64} {
  func.func @concept_linear_kernel(%arg0: i32, %arg1: memref<4x16x128xbf16, #tpu.memory_space<vmem>>, %arg2: memref<16x4xf32, #tpu.memory_space<vmem>>, %arg3: memref<128x128xbf16, #tpu.memory_space<vmem>>, %arg4: memref<1x128xf32, #tpu.memory_space<vmem>>, %arg5: memref<128x128xbf16, #tpu.memory_space<vmem>>, %arg6: memref<1x128xf32, #tpu.memory_space<vmem>>, %arg7: memref<256x128xbf16, #tpu.memory_space<vmem>>, %arg8: memref<1x128xf32, #tpu.memory_space<vmem>>, %arg9: memref<1x128xf32, #tpu.memory_space<vmem>>, %arg10: memref<16x128xf32, #tpu.memory_space<vmem>>) attributes {dimension_semantics = [#tpu.dimension_semantics<parallel>], iteration_bounds = array<i64: 1>, scalar_prefetch = 0 : i64, scratch_operands = 0 : i64, tpu.core_type = #tpu.core_type<tc>, window_params = [{transform_indices = @transform_0, window_bounds = array<i64: 4, 16, 128>}, {transform_indices = @transform_1, window_bounds = array<i64: 16, 4>}, {pipeline_mode = #tpu.pipeline_mode<synchronous>, transform_indices = @transform_2, window_bounds = array<i64: 128, 128>}, {pipeline_mode = #tpu.pipeline_mode<synchronous>, transform_indices = @transform_3, window_bounds = array<i64: 1, 128>}, {pipeline_mode = #tpu.pipeline_mode<synchronous>, transform_indices = @transform_4, window_bounds = array<i64: 128, 128>}, {pipeline_mode = #tpu.pipeline_mode<synchronous>, transform_indices = @transform_5, window_bounds = array<i64: 1, 128>}, {pipeline_mode = #tpu.pipeline_mode<synchronous>, transform_indices = @transform_6, window_bounds = array<i64: 256, 128>}, {pipeline_mode = #tpu.pipeline_mode<synchronous>, transform_indices = @transform_7, window_bounds = array<i64: 1, 128>}, {pipeline_mode = #tpu.pipeline_mode<synchronous>, transform_indices = @transform_8, window_bounds = array<i64: 1, 128>}, {transform_indices = @transform_9, window_bounds = array<i64: 16, 128>}]} {
    %c0 = arith.constant 0 : index
    %c0_0 = arith.constant 0 : index
    %0 = vector.load %arg3[%c0, %c0_0] : memref<128x128xbf16, #tpu.memory_space<vmem>>, vector<128x128xbf16>
    %c0_1 = arith.constant 0 : index
    %c0_2 = arith.constant 0 : index
    %1 = vector.load %arg4[%c0_1, %c0_2] : memref<1x128xf32, #tpu.memory_space<vmem>>, vector<1x128xf32>
    %c0_3 = arith.constant 0 : index
    %c0_4 = arith.constant 0 : index
    %2 = vector.load %arg2[%c0_3, %c0_4] : memref<16x4xf32, #tpu.memory_space<vmem>>, vector<16x4xf32>
    %cst = arith.constant 0.000000e+00 : f32
    %3 = vector.broadcast %cst : f32 to vector<16x128xf32>
    %cst_5 = arith.constant 0.000000e+00 : f32
    %4 = vector.broadcast %cst_5 : f32 to vector<16x128xf32>
    %c0_6 = arith.constant 0 : index
    %c0_7 = arith.constant 0 : index
    %c0_8 = arith.constant 0 : index
    %5 = vector.load %arg1[%c0_6, %c0_7, %c0_8] : memref<4x16x128xbf16, #tpu.memory_space<vmem>>, vector<1x16x128xbf16>
    %6 = vector.shape_cast %5 : vector<1x16x128xbf16> to vector<16x128xbf16>
    %cst_9 = arith.constant dense<0.000000e+00> : vector<16x128xf32>
    %7 = tpu.matmul %6, %0, %cst_9 {dimension_numbers = #tpu.dot_dimension_numbers<[1], [0], [0], [1], [0, 0, 1, 1], [], []>} : vector<16x128xbf16>, vector<128x128xbf16>, vector<16x128xf32> -> vector<16x128xf32>
    %8 = vector.broadcast %1 : vector<1x128xf32> to vector<16x128xf32>
    %9 = arith.addf %7, %8 : vector<16x128xf32>
    %cst_10 = arith.constant 0.00999999977 : f32
    %10 = vector.broadcast %cst_10 : f32 to vector<16x128xf32>
    %11 = arith.mulf %10, %9 : vector<16x128xf32>
    %12 = arith.maximumf %9, %11 : vector<16x128xf32>
    %13 = vector.extract_strided_slice %2 {offsets = [0, 0], sizes = [16, 1], strides = [1, 1]} : vector<16x4xf32> to vector<16x1xf32>
    %14 = vector.broadcast %13 : vector<16x1xf32> to vector<16x128xf32>
    %15 = arith.mulf %14, %12 : vector<16x128xf32>
    %16 = arith.addf %3, %15 : vector<16x128xf32>
    %17 = arith.extf %6 : vector<16x128xbf16> to vector<16x128xf32>
    %18 = arith.addf %4, %17 : vector<16x128xf32>
    %c1 = arith.constant 1 : index
    %c0_11 = arith.constant 0 : index
    %c0_12 = arith.constant 0 : index
    %19 = vector.load %arg1[%c1, %c0_11, %c0_12] : memref<4x16x128xbf16, #tpu.memory_space<vmem>>, vector<1x16x128xbf16>
    %20 = vector.shape_cast %19 : vector<1x16x128xbf16> to vector<16x128xbf16>
    %cst_13 = arith.constant dense<0.000000e+00> : vector<16x128xf32>
    %21 = tpu.matmul %20, %0, %cst_13 {dimension_numbers = #tpu.dot_dimension_numbers<[1], [0], [0], [1], [0, 0, 1, 1], [], []>} : vector<16x128xbf16>, vector<128x128xbf16>, vector<16x128xf32> -> vector<16x128xf32>
    %22 = vector.broadcast %1 : vector<1x128xf32> to vector<16x128xf32>
    %23 = arith.addf %21, %22 : vector<16x128xf32>
    %cst_14 = arith.constant 0.00999999977 : f32
    %24 = vector.broadcast %cst_14 : f32 to vector<16x128xf32>
    %25 = arith.mulf %24, %23 : vector<16x128xf32>
    %26 = arith.maximumf %23, %25 : vector<16x128xf32>
    %27 = vector.extract_strided_slice %2 {offsets = [0, 1], sizes = [16, 1], strides = [1, 1]} : vector<16x4xf32> to vector<16x1xf32>
    %28 = vector.broadcast %27 : vector<16x1xf32> to vector<16x128xf32>
    %29 = arith.mulf %28, %26 : vector<16x128xf32>
    %30 = arith.addf %16, %29 : vector<16x128xf32>
    %31 = arith.extf %20 : vector<16x128xbf16> to vector<16x128xf32>
    %32 = arith.addf %18, %31 : vector<16x128xf32>
    %c2 = arith.constant 2 : index
    %c0_15 = arith.constant 0 : index
    %c0_16 = arith.constant 0 : index
    %33 = vector.load %arg1[%c2, %c0_15, %c0_16] : memref<4x16x128xbf16, #tpu.memory_space<vmem>>, vector<1x16x128xbf16>
    %34 = vector.shape_cast %33 : vector<1x16x128xbf16> to vector<16x128xbf16>
    %cst_17 = arith.constant dense<0.000000e+00> : vector<16x128xf32>
    %35 = tpu.matmul %34, %0, %cst_17 {dimension_numbers = #tpu.dot_dimension_numbers<[1], [0], [0], [1], [0, 0, 1, 1], [], []>} : vector<16x128xbf16>, vector<128x128xbf16>, vector<16x128xf32> -> vector<16x128xf32>
    %36 = vector.broadcast %1 : vector<1x128xf32> to vector<16x128xf32>
    %37 = arith.addf %35, %36 : vector<16x128xf32>
    %cst_18 = arith.constant 0.00999999977 : f32
    %38 = vector.broadcast %cst_18 : f32 to vector<16x128xf32>
    %39 = arith.mulf %38, %37 : vector<16x128xf32>
    %40 = arith.maximumf %37, %39 : vector<16x128xf32>
    %41 = vector.extract_strided_slice %2 {offsets = [0, 2], sizes = [16, 1], strides = [1, 1]} : vector<16x4xf32> to vector<16x1xf32>
    %42 = vector.broadcast %41 : vector<16x1xf32> to vector<16x128xf32>
    %43 = arith.mulf %42, %40 : vector<16x128xf32>
    %44 = arith.addf %30, %43 : vector<16x128xf32>
    %45 = arith.extf %34 : vector<16x128xbf16> to vector<16x128xf32>
    %46 = arith.addf %32, %45 : vector<16x128xf32>
    %c3 = arith.constant 3 : index
    %c0_19 = arith.constant 0 : index
    %c0_20 = arith.constant 0 : index
    %47 = vector.load %arg1[%c3, %c0_19, %c0_20] : memref<4x16x128xbf16, #tpu.memory_space<vmem>>, vector<1x16x128xbf16>
    %48 = vector.shape_cast %47 : vector<1x16x128xbf16> to vector<16x128xbf16>
    %cst_21 = arith.constant dense<0.000000e+00> : vector<16x128xf32>
    %49 = tpu.matmul %48, %0, %cst_21 {dimension_numbers = #tpu.dot_dimension_numbers<[1], [0], [0], [1], [0, 0, 1, 1], [], []>} : vector<16x128xbf16>, vector<128x128xbf16>, vector<16x128xf32> -> vector<16x128xf32>
    %50 = vector.broadcast %1 : vector<1x128xf32> to vector<16x128xf32>
    %51 = arith.addf %49, %50 : vector<16x128xf32>
    %cst_22 = arith.constant 0.00999999977 : f32
    %52 = vector.broadcast %cst_22 : f32 to vector<16x128xf32>
    %53 = arith.mulf %52, %51 : vector<16x128xf32>
    %54 = arith.maximumf %51, %53 : vector<16x128xf32>
    %55 = vector.extract_strided_slice %2 {offsets = [0, 3], sizes = [16, 1], strides = [1, 1]} : vector<16x4xf32> to vector<16x1xf32>
    %56 = vector.broadcast %55 : vector<16x1xf32> to vector<16x128xf32>
    %57 = arith.mulf %56, %54 : vector<16x128xf32>
    %58 = arith.addf %44, %57 : vector<16x128xf32>
    %59 = arith.extf %48 : vector<16x128xbf16> to vector<16x128xf32>
    %60 = arith.addf %46, %59 : vector<16x128xf32>
    %cst_23 = arith.constant dense<0.000000e+00> : vector<16xf32>
    %61 = vector.multi_reduction <add>, %2, %cst_23 [1] : vector<16x4xf32> to vector<16xf32>
    %62 = vector.shape_cast %61 : vector<16xf32> to vector<16x1xf32>
    %cst_24 = arith.constant 2.500000e-01 : f32
    %63 = vector.broadcast %cst_24 : f32 to vector<16x128xf32>
    %64 = arith.mulf %60, %63 : vector<16x128xf32>
    %65 = arith.truncf %64 : vector<16x128xf32> to vector<16x128xbf16>
    %c0_25 = arith.constant 0 : index
    %c0_26 = arith.constant 0 : index
    %66 = vector.load %arg5[%c0_25, %c0_26] : memref<128x128xbf16, #tpu.memory_space<vmem>>, vector<128x128xbf16>
    %cst_27 = arith.constant dense<0.000000e+00> : vector<16x128xf32>
    %67 = tpu.matmul %65, %66, %cst_27 {dimension_numbers = #tpu.dot_dimension_numbers<[1], [0], [0], [1], [0, 0, 1, 1], [], []>} : vector<16x128xbf16>, vector<128x128xbf16>, vector<16x128xf32> -> vector<16x128xf32>
    %c0_28 = arith.constant 0 : index
    %c0_29 = arith.constant 0 : index
    %68 = vector.load %arg6[%c0_28, %c0_29] : memref<1x128xf32, #tpu.memory_space<vmem>>, vector<1x128xf32>
    %69 = vector.broadcast %68 : vector<1x128xf32> to vector<16x128xf32>
    %70 = arith.addf %67, %69 : vector<16x128xf32>
    %cst_30 = arith.constant 0.00999999977 : f32
    %71 = vector.broadcast %cst_30 : f32 to vector<16x128xf32>
    %72 = arith.mulf %71, %70 : vector<16x128xf32>
    %73 = arith.maximumf %70, %72 : vector<16x128xf32>
    %74 = arith.truncf %58 : vector<16x128xf32> to vector<16x128xbf16>
    %75 = arith.truncf %73 : vector<16x128xf32> to vector<16x128xbf16>
    %76 = tpu.concatenate %74, %75 in 1 : vector<16x128xbf16>, vector<16x128xbf16> -> vector<16x256xbf16>
    %c0_31 = arith.constant 0 : index
    %c0_32 = arith.constant 0 : index
    %77 = vector.load %arg7[%c0_31, %c0_32] : memref<256x128xbf16, #tpu.memory_space<vmem>>, vector<256x128xbf16>
    %cst_33 = arith.constant dense<0.000000e+00> : vector<16x128xf32>
    %78 = tpu.matmul %76, %77, %cst_33 {dimension_numbers = #tpu.dot_dimension_numbers<[1], [0], [0], [1], [0, 0, 1, 1], [], []>} : vector<16x256xbf16>, vector<256x128xbf16>, vector<16x128xf32> -> vector<16x128xf32>
    %c0_34 = arith.constant 0 : index
    %c0_35 = arith.constant 0 : index
    %79 = vector.load %arg8[%c0_34, %c0_35] : memref<1x128xf32, #tpu.memory_space<vmem>>, vector<1x128xf32>
    %80 = vector.broadcast %62 : vector<16x1xf32> to vector<16x128xf32>
    %81 = vector.broadcast %79 : vector<1x128xf32> to vector<16x128xf32>
    %82 = arith.mulf %80, %81 : vector<16x128xf32>
    %83 = arith.addf %78, %82 : vector<16x128xf32>
    %c0_36 = arith.constant 0 : index
    %c0_37 = arith.constant 0 : index
    %84 = vector.load %arg9[%c0_36, %c0_37] : memref<1x128xf32, #tpu.memory_space<vmem>>, vector<1x128xf32>
    %85 = vector.broadcast %84 : vector<1x128xf32> to vector<16x128xf32>
    %86 = arith.addf %83, %85 : vector<16x128xf32>
    %c0_38 = arith.constant 0 : index
    %c0_39 = arith.constant 0 : index
    %87 = vector.load %arg10[%c0_38, %c0_39] : memref<16x128xf32, #tpu.memory_space<vmem>>, vector<16x128xf32>
    tpu.vector_store %arg10[%c0_38, %c0_39], %86 {strides = array<i32>} : memref<16x128xf32, #tpu.memory_space<vmem>>, vector<16x128xf32>,
    return
  }
  func.func @transform_0(%arg0: i32) -> (i32, i32, i32) {
    %c0_i32 = arith.constant 0 : i32
    %c0_i32_0 = arith.constant 0 : i32
    %c0_i32_1 = arith.constant 0 : i32
    return %c0_i32, %arg0, %c0_i32_0 : i32, i32, i32
  }
  func.func @transform_1(%arg0: i32) -> (i32, i32) {
    %c0_i32 = arith.constant 0 : i32
    %c0_i32_0 = arith.constant 0 : i32
    return %arg0, %c0_i32 : i32, i32
  }
  func.func @transform_2(%arg0: i32) -> (i32, i32) {
    %c0_i32 = arith.constant 0 : i32
    %c0_i32_0 = arith.constant 0 : i32
    %c0_i32_1 = arith.constant 0 : i32
    return %c0_i32, %c0_i32_0 : i32, i32
  }
  func.func @transform_3(%arg0: i32) -> (i32, i32) {
    %c0_i32 = arith.constant 0 : i32
    %c0_i32_0 = arith.constant 0 : i32
    %c0_i32_1 = arith.constant 0 : i32
    return %c0_i32, %c0_i32_0 : i32, i32
  }
  func.func @transform_4(%arg0: i32) -> (i32, i32) {
    %c0_i32 = arith.constant 0 : i32
    %c0_i32_0 = arith.constant 0 : i32
    %c0_i32_1 = arith.constant 0 : i32
    return %c0_i32, %c0_i32_0 : i32, i32
  }
  func.func @transform_5(%arg0: i32) -> (i32, i32) {
    %c0_i32 = arith.constant 0 : i32
    %c0_i32_0 = arith.constant 0 : i32
    %c0_i32_1 = arith.constant 0 : i32
    return %c0_i32, %c0_i32_0 : i32, i32
  }
  func.func @transform_6(%arg0: i32) -> (i32, i32) {
    %c0_i32 = arith.constant 0 : i32
    %c0_i32_0 = arith.constant 0 : i32
    %c0_i32_1 = arith.constant 0 : i32
    return %c0_i32, %c0_i32_0 : i32, i32
  }
  func.func @transform_7(%arg0: i32) -> (i32, i32) {
    %c0_i32 = arith.constant 0 : i32
    %c0_i32_0 = arith.constant 0 : i32
    %c0_i32_1 = arith.constant 0 : i32
    return %c0_i32, %c0_i32_0 : i32, i32
  }
  func.func @transform_8(%arg0: i32) -> (i32, i32) {
    %c0_i32 = arith.constant 0 : i32
    %c0_i32_0 = arith.constant 0 : i32
    %c0_i32_1 = arith.constant 0 : i32
    return %c0_i32, %c0_i32_0 : i32, i32
  }
  func.func @transform_9(%arg0: i32) -> (i32, i32) {
    %c0_i32 = arith.constant 0 : i32
    %c0_i32_0 = arith.constant 0 : i32
    return %arg0, %c0_i32 : i32, i32
  }
}

</mosaic_0001>

<bundles_post_ra>
// kernel: concept_linear_forward.1
= control target key start
LH: loop header
LB: loop body
LE: loop exit
PB: predicated region body
PF: predicated region fallthrough
CT: control target
= control target key end

     0   :  { %v760_v4 = vmov 0   ;;  %v761_v7 = vmov 1   ;;  %v762_v18 = vmov 3   ;;  %v763_v23 = vmov 2   ;;  %s974_s2 = inlined_call_operand.vmem [shape: bf16[128,128], index: 2, kind: input, shape index: {}]   ;;  %s975_s3 = inlined_call_operand.vmem [shape: f32[1,128], index: 3, kind: input, shape index: {}]   ;;  %s976_s1 = inlined_call_operand.vmem [shape: f32[16,4], index: 1, kind: input, shape index: {}]   ;;  %s977_s4 = inlined_call_operand.vmem [shape: bf16[128,128], index: 4, kind: input, shape index: {}]   ;;  %s978_s0 = inlined_call_operand.vmem [shape: bf16[4,16,128], index: 0, kind: input, shape index: {}]   ;;  %s979_s6 = inlined_call_operand.vmem [shape: bf16[256,128], index: 6, kind: input, shape index: {}]   ;;  %s980_s5 = inlined_call_operand.vmem [shape: f32[1,128], index: 5, kind: input, shape index: {}]   ;;  %s981_s7 = inlined_call_operand.vmem [shape: f32[1,128], index: 7, kind: input, shape index: {}]   ;;  %s982_s8 = inlined_call_operand.vmem [shape: f32[1,128], index: 8, kind: input, shape index: {}]   ;;  %s983_s9 = inlined_call_operand.vmem [shape: f32[16,128], index: 9, kind: output, shape index: {}]  }
   0x1   :  { %v718_v0 = vld [vmem:[%s974_s2 + $0x38] sm:$0xff]  ;;  %v717_v1 = vld [vmem:[%s974_s2 + $0x30] sm:$0xff]  ;;  %v716_v2 = vld [vmem:[%s974_s2 + $0x28] sm:$0xff]  ;;  %751 = vset.pattern.permute.xlu0 %v760_v4  ;;  %752 = vset.pattern.permute.xlu1 %v761_v7  ;;  %vm275_vm0 = vcmask 31744  }
   0x2   :  { %110 = vmatpush.bf16.msra.mxu0 %v718_v0  ;;  %198 = vmatpush.bf16.msra.mxu2 %v718_v0  ;;  %v715_v3 = vld [vmem:[%s974_s2 + $0x20] sm:$0xff]  ;;  %v714_v5 = vld [vmem:[%s974_s2 + $0x18] sm:$0xff]  ;;  %v713_v8 = vld [vmem:[%s974_s2 + $0x10] sm:$0xff] }
   0x3   :  { %241 = vmatpush.bf16.msra.mxu3 %v718_v0  ;;  %155 = vmatpush.bf16.msra.mxu1 %v718_v0  ;;  %v832_v6 = vld [vmem:[%s976_s1] sm:$0xff]  ;;  %v712_v9 = vld [vmem:[%s974_s2 + $0x8] sm:$0xff]  ;;  %v730_v12 = vld [vmem:[%s977_s4 + $0x38] sm:$0xff] }
   0x4   :  { %130 = vperm.xlu0 %751, %v832_v6   ;;  %174 = vperm.xlu1 %752, %v832_v6   ;;  %v845_v10 = vld [vmem:[%s976_s1 + $0x8] sm:$0xff]  ;;  %v711_v11 = vld [vmem:[%s974_s2] sm:$0xff]  ;;  %v721_v13 = vld [vmem:[%s978_s0 + $0x10] sm:$0xff] }
   0x5   :  { %v719_v14 = vld [vmem:[%s978_s0] sm:$0xff]  ;;  %v722_v15 = vld [vmem:[%s978_s0 + $0x18] sm:$0xff]  ;;  %v729_v16 = vld [vmem:[%s977_s4 + $0x30] sm:$0xff]  ;;  %753 = vset.pattern.permute.xlu2 %v763_v23 }
   0x6   :  { %111 = vmatpush.bf16.msra.mxu0 %v717_v1  ;;  %199 = vmatpush.bf16.msra.mxu2 %v717_v1  ;;  %v720_v17 = vld [vmem:[%s978_s0 + $0x8] sm:$0xff]  ;;  %v738_v19 = vld [vmem:[%s979_s6 + $0x38] sm:$0xff]  ;;  %v51_v21 = vld [vmem:[%s978_s0] sm:$0xff]  }
   0x7   :  { %242 = vmatpush.bf16.msra.mxu3 %v717_v1  ;;  %156 = vmatpush.bf16.msra.mxu1 %v717_v1  ;;  %v728_v20 = vld [vmem:[%s977_s4 + $0x28] sm:$0xff]  ;;  %v142_v24 = vunpack.c.l.bf16 %v51_v21  ;;  %v143_v25 = vunpack.c.h.bf16 %v51_v21  ;;  %v727_v28 = vld [vmem:[%s977_s4 + $0x20] sm:$0xff]  ;;  %v603_v29 = vld [vmem:[%s978_s0 + $0x10] sm:$0xff]  }
   0x8   :  { %v597_v22 = vld [vmem:[%s978_s0 + $0x8] sm:$0xff]   ;;  %217 = vperm.xlu2 %753, %v832_v6   ;;  %v228_v32 = vunpack.c.l.bf16 %v603_v29  ;;  %v229_v33 = vunpack.c.h.bf16 %v603_v29  ;;  %v726_v34 = vld [vmem:[%s977_s4 + $0x18] sm:$0xff]  ;;  %v725_v40 = vld [vmem:[%s977_s4 + $0x10] sm:$0xff] }
   0x9   :  { %v185_v26 = vunpack.c.l.bf16 %v597_v22  ;;  %v186_v27 = vunpack.c.h.bf16 %v597_v22  ;;  %v609_v35 = vld [vmem:[%s978_s0 + $0x18] sm:$0xff]   ;;  %v724_v43 = vld [vmem:[%s977_s4 + $0x8] sm:$0xff]  ;;  %v723_v46 = vld [vmem:[%s977_s4] sm:$0xff] }
   0xa   :  { %112 = vmatpush.bf16.msra.mxu0 %v716_v2  ;;  %200 = vmatpush.bf16.msra.mxu2 %v716_v2  ;;  %v271_v38 = vunpack.c.l.bf16 %v609_v35  ;;  %v272_v39 = vunpack.c.h.bf16 %v609_v35  ;;  %v737_v48 = vld [vmem:[%s979_s6 + $0x30] sm:$0xff]  ;;  %v736_v49 = vld [vmem:[%s979_s6 + $0x28] sm:$0xff]  ;;  %v735_v50 = vld [vmem:[%s979_s6 + $0x20] sm:$0xff] }
   0xb   :  { %243 = vmatpush.bf16.msra.mxu3 %v716_v2  ;;  %157 = vmatpush.bf16.msra.mxu1 %v716_v2  ;;  %v187_v30 = vadd.f32 %v185_v26, %v142_v24  ;;  %v188_v31 = vadd.f32 %v186_v27, %v143_v25  ;;  %v734_v51 = vld [vmem:[%s979_s6 + $0x18] sm:$0xff]  ;;  %v733_v53 = vld [vmem:[%s979_s6 + $0x10] sm:$0xff]  ;;  %v732_v56 = vld [vmem:[%s979_s6 + $0x8] sm:$0xff] }
   0xc   :  { %135 = vperm.xlu0 %751, %v845_v10   ;;  %178 = vperm.xlu1 %752, %v845_v10   ;;  %v746_v52 = vld [vmem:[%s979_s6 + $0x78] sm:$0xff]  ;;  %v745_v54 = vld [vmem:[%s979_s6 + $0x70] sm:$0xff]  ;;  %v744_v57 = vld [vmem:[%s979_s6 + $0x68] sm:$0xff] }
   0xd   :  { %v230_v36 = vadd.f32 %v228_v32, %v187_v30  ;;  %v231_v37 = vadd.f32 %v229_v33, %v188_v31  ;;  %v731_v58 = vld [vmem:[%s979_s6] sm:$0xff]  ;;  %v742_v1 = vld [vmem:[%s979_s6 + $0x58] sm:$0xff]  ;;  %v740_v23 = vld [vmem:[%s979_s6 + $0x48] sm:$0xff] }
   0xe   :  { %113 = vmatpush.bf16.msra.mxu0 %v715_v3  ;;  %201 = vmatpush.bf16.msra.mxu2 %v715_v3  ;;  %v756_v59 = vld [vmem:[%s975_s3] ss:$0 sm:$0xff] }
   0xf   :  { %244 = vmatpush.bf16.msra.mxu3 %v715_v3  ;;  %158 = vmatpush.bf16.msra.mxu1 %v715_v3  ;;  %v273_v41 = vadd.f32 %v271_v38, %v230_v36  ;;  %v274_v42 = vadd.f32 %v272_v39, %v231_v37  ;;  %v743_v60 = vld [vmem:[%s979_s6 + $0x60] sm:$0xff]  ;;  %v279_v37 = vsel %vm275_vm0, %v845_v10, 0.0 }
  0x10   :  { %221 = vperm.xlu2 %753, %v845_v10  }
  0x11   :  { %v282_v44 = vmul.f32 0.25, %v273_v41  ;;  %v283_v45 = vmul.f32 0.25, %v274_v42 }
  0x12   :  { %114 = vmatpush.bf16.msra.mxu0 %v714_v5  ;;  %202 = vmatpush.bf16.msra.mxu2 %v714_v5 }
  0x13   :  { %245 = vmatpush.bf16.msra.mxu3 %v714_v5  ;;  %159 = vmatpush.bf16.msra.mxu1 %v714_v5  ;;  %v284_v47 = vpack.c.bf16 %v283_v45, %v282_v44 }
  0x14   :  { %754 = vset.pattern.permute.xlu0 %v762_v18  ;;  %755 = vset.pattern.permute.xlu1 %v762_v18  ;;  %v276_v18 = vsel %vm275_vm0, %v832_v6, 0.0 }
  0x15   :  { %260 = vperm.xlu0 %754, %v832_v6   ;;  %264 = vperm.xlu1 %755, %v845_v10  }
  0x16   :  { %115 = vmatpush.bf16.msra.mxu0 %v713_v8  ;;  %203 = vmatpush.bf16.msra.mxu2 %v713_v8 }
  0x17   :  { %246 = vmatpush.bf16.msra.mxu3 %v713_v8  ;;  %160 = vmatpush.bf16.msra.mxu1 %v713_v8  ;;  %v741_v8 = vld [vmem:[%s979_s6 + $0x50] sm:$0xff] }
  0x1a   :  { %116 = vmatpush.bf16.msra.mxu0 %v712_v9  ;;  %204 = vmatpush.bf16.msra.mxu2 %v712_v9 }
  0x1b   :  { %247 = vmatpush.bf16.msra.mxu3 %v712_v9  ;;  %161 = vmatpush.bf16.msra.mxu1 %v712_v9 }
  0x1e   :  { %117 = vmatpush.bf16.msra.mxu0 %v711_v11  ;;  %205 = vmatpush.bf16.msra.mxu2 %v711_v11 }
  0x1f   :  { %248 = vmatpush.bf16.msra.mxu3 %v711_v11  ;;  %162 = vmatpush.bf16.msra.mxu1 %v711_v11 }
  0x21   :  { %206 = vmatmul.bf16.vlgmr.msra.gmra.mxu2 %v721_v13  ;;  %118 = vmatmul.bf16.vlgmr.msra.gmra.mxu0 %v719_v14 }
  0x22   :  { %353 = vmatpush.bf16.msrb.mxu0 %v730_v12  ;;  %249 = vmatmul.bf16.vlgmr.msra.gmra.mxu3 %v722_v15 }
  0x23   :  { %163 = vmatmul.bf16.vlgmr.msra.gmra.mxu1 %v720_v17  ;;  %535 = vmatpush.bf16.msrb.mxu2 %v746_v52 }
  0x24   :  { %521 = vmatpush.bf16.msrb.mxu1 %v738_v19 }
  0x26   :  { %354 = vmatpush.bf16.msrb.mxu0 %v729_v16 }
  0x27   :  { %536 = vmatpush.bf16.msrb.mxu2 %v745_v54 }
  0x28   :  { %522 = vmatpush.bf16.msrb.mxu1 %v737_v48 }
  0x2a   :  { %355 = vmatpush.bf16.msrb.mxu0 %v728_v20 }
  0x2b   :  { %537 = vmatpush.bf16.msrb.mxu2 %v744_v57  ;;  %v757_v57 = vld [vmem:[%s980_s5] ss:$0 sm:$0xff] }
  0x2c   :  { %523 = vmatpush.bf16.msrb.mxu1 %v736_v49 }
  0x2e   :  { %356 = vmatpush.bf16.msrb.mxu0 %v727_v28 }
  0x2f   :  { %538 = vmatpush.bf16.msrb.mxu2 %v743_v60 }
  0x30   :  { %524 = vmatpush.bf16.msrb.mxu1 %v735_v50 }
  0x32   :  { %357 = vmatpush.bf16.msrb.mxu0 %v726_v34  ;;  %v739_v34 = vld [vmem:[%s979_s6 + $0x40] sm:$0xff] }
  0x33   :  { %539 = vmatpush.bf16.msrb.mxu2 %v742_v1 }
  0x34   :  { %525 = vmatpush.bf16.msrb.mxu1 %v734_v51 }
  0x36   :  { %358 = vmatpush.bf16.msrb.mxu0 %v725_v40 }
  0x37   :  { %540 = vmatpush.bf16.msrb.mxu2 %v741_v8 }
  0x38   :  { %526 = vmatpush.bf16.msrb.mxu1 %v733_v53 }
  0x39   :  { %277 = vadd.xlane.f32.xlu2 %v276_v18  ;;  %v759_v18 = vld [vmem:[%s982_s8] ss:$0 sm:$0xff] }
  0x3a   :  { %359 = vmatpush.bf16.msrb.mxu0 %v724_v43 }
  0x3b   :  { %541 = vmatpush.bf16.msrb.mxu2 %v740_v23 }
  0x3c   :  { %527 = vmatpush.bf16.msrb.mxu1 %v732_v56 }
  0x3e   :  { %360 = vmatpush.bf16.msrb.mxu0 %v723_v46 }
  0x3f   :  { %542 = vmatpush.bf16.msrb.mxu2 %v739_v34  ;;  %280 = vadd.xlane.f32.xlu1 %v279_v37 }
  0x40   :  { %528 = vmatpush.bf16.msrb.mxu1 %v731_v58 }
  0x41   :  { %361 = vmatmul.bf16.vlgmr.msrb.gmra.mxu0 %v284_v47 }
  0x62   :  { %v218_v17 = vpop.permute.xlu2 %217 }
  0x6a   :  { %v222_v47 = vpop.permute.xlu2 %221 }
  0x76   :  { %v131_v55 = vpop.permute.xlu0 %130  ;;  %v175_v61 = vpop.permute.xlu1 %174 }
  0x7e   :  { %v136_v0 = vpop.permute.xlu0 %135  ;;  %v179_v22 = vpop.permute.xlu1 %178 }
  0x87   :  { %v261_v30 = vpop.permute.xlu0 %260  ;;  %v265_v51 = vpop.permute.xlu1 %264 }
  0x9e   :  { %v119_v62 = vpop.f32.mrf.mxu0 }
  0x9f   :  { %v120_v63 = vadd.f32 %v756_v59, %v119_v62 }
  0xa0   :  { %v164_v2 = vpop.f32.mrf.mxu1 }
  0xa1   :  { %v124_v3 = vmul.f32 0.01, %v120_v63  ;;  %v165_v4 = vadd.f32 %v756_v59, %v164_v2 }
  0xa3   :  { %v169_v5 = vmul.f32 0.01, %v165_v4  ;;  %v126_v7 = vmax.f32 %v120_v63, %v124_v3 }
  0xa4   :  { %v207_v9 = vpop.f32.mrf.mxu2 }
  0xa5   :  { %v138_v11 = vmul.f32 %v131_v55, %v126_v7  ;;  %v171_v12 = vmax.f32 %v165_v4, %v169_v5  ;;  %v208_v13 = vadd.f32 %v756_v59, %v207_v9  ;;  %v250_v14 = vpop.f32.mrf.mxu3 }
  0xa6   :  { %v251_v15 = vadd.f32 %v756_v59, %v250_v14  ;;  %v121_v16 = vpop.f32.mrf.mxu0 }
  0xa7   :  { %v181_v19 = vmul.f32 %v175_v61, %v171_v12  ;;  %v212_v20 = vmul.f32 0.01, %v208_v13  ;;  %v122_v21 = vadd.f32 %v756_v59, %v121_v16 }
  0xa8   :  { %v255_v24 = vmul.f32 0.01, %v251_v15  ;;  %v166_v25 = vpop.f32.mrf.mxu1 }
  0xa9   :  { %v183_v26 = vadd.f32 %v181_v19, %v138_v11  ;;  %v125_v27 = vmul.f32 0.01, %v122_v21  ;;  %v167_v28 = vadd.f32 %v756_v59, %v166_v25  ;;  %v214_v29 = vmax.f32 %v208_v13, %v212_v20  ;;  %v758_v13 = vld [vmem:[%s981_s7] ss:$0 sm:$0xff] }
  0xaa   :  { %v257_v31 = vmax.f32 %v251_v15, %v255_v24 }
  0xab   :  { %v170_v32 = vmul.f32 0.01, %v167_v28  ;;  %v224_v6 = vmul.f32 %v218_v17, %v214_v29  ;;  %v127_v33 = vmax.f32 %v122_v21, %v125_v27 }
  0xac   :  { %v209_v35 = vpop.f32.mrf.mxu2  ;;  %v267_v36 = vmul.f32 %v261_v30, %v257_v31  ;;  %v278_v14 = vpop.xlane.xlu2 %277 }
  0xad   :  { %v226_v38 = vadd.f32 %v224_v6, %v183_v26  ;;  %v139_v39 = vmul.f32 %v136_v0, %v127_v33  ;;  %v172_v40 = vmax.f32 %v167_v28, %v170_v32  ;;  %v210_v41 = vadd.f32 %v756_v59, %v209_v35  ;;  %v252_v42 = vpop.f32.mrf.mxu3 }
  0xae   :  { %v253_v43 = vadd.f32 %v756_v59, %v252_v42  ;;  %v423_v16 = vmul.f32 %v758_v13, %v278_v14 }
  0xaf   :  { %v182_v44 = vmul.f32 %v179_v22, %v172_v40  ;;  %v213_v45 = vmul.f32 0.01, %v210_v41  ;;  %v269_v50 = vadd.f32 %v267_v36, %v226_v38 }
  0xb0   :  { %v256_v46 = vmul.f32 0.01, %v253_v43 }
  0xb1   :  { %v184_v48 = vadd.f32 %v182_v44, %v139_v39  ;;  %v215_v49 = vmax.f32 %v210_v41, %v213_v45  ;;  %v371_v55 = vpack.c.bf16 %v269_v50, %v269_v50 }
  0xb2   :  { %v258_v52 = vmax.f32 %v253_v43, %v256_v46  ;;  %v281_v19 = vpop.xlane.xlu1 %280 }
  0xb3   :  { %v225_v53 = vmul.f32 %v222_v47, %v215_v49  ;;  %v377_v58 = vunpack.c.l.b16 %v371_v55  ;;  %v424_v22 = vmul.f32 %v758_v13, %v281_v19 }
  0xb4   :  { %v268_v54 = vmul.f32 %v265_v51, %v258_v52 }
  0xb5   :  { %v227_v10 = vadd.f32 %v225_v53, %v184_v48 }
  0xb7   :  { %v270_v56 = vadd.f32 %v268_v54, %v227_v10 }
  0xb9   :  { %v372_v59 = vpack.c.bf16 %v270_v56, %v270_v56 }
  0xbb   :  { %v378_v60 = vunpack.c.l.b16 %v372_v59 }
  0xbd   :  { %v379_v63 = vpack.c.b16 %v378_v60, %v377_v58 }
  0xbe   :  { %v362_v61 = vpop.f32.mrf.mxu0 }
  0xbf   :  { %v363_v62 = vadd.f32 %v757_v57, %v362_v61  ;;  %529 = vmatmul.bf16.vlgmr.msrb.gmra.mxu1 %v379_v63 }
  0xc1   :  { %v367_v0 = vmul.f32 0.01, %v363_v62 }
  0xc3   :  { %v369_v2 = vmax.f32 %v363_v62, %v367_v0 }
  0xc5   :  { %v373_v5 = vpack.c.bf16 %v369_v2, %v369_v2 }
  0xc6   :  { %v364_v1 = vpop.f32.mrf.mxu0 }
  0xc7   :  { %v365_v3 = vadd.f32 %v757_v57, %v364_v1  ;;  %v383_v9 = vunpack.c.l.b16 %v373_v5 }
  0xc9   :  { %v368_v4 = vmul.f32 0.01, %v365_v3 }
  0xcb   :  { %v370_v7 = vmax.f32 %v365_v3, %v368_v4 }
  0xcd   :  { %v374_v8 = vpack.c.bf16 %v370_v7, %v370_v7 }
  0xcf   :  { %v384_v11 = vunpack.c.l.b16 %v374_v8 }
  0xd1   :  { %v385_v12 = vpack.c.b16 %v384_v11, %v383_v9 }
  0xd3   :  { %543 = vmatmul.bf16.vlgmr.msrb.gmra.mxu2 %v385_v12 }
 0x13c   :  { %v530_v15 = vpop.f32.mrf.mxu1 }
 0x13d   :  { %v531_v17 = vadd.f32 %v530_v15, %v423_v16 }
 0x144   :  { %v532_v24 = vpop.f32.mrf.mxu1 }
 0x145   :  { %v533_v25 = vadd.f32 %v532_v24, %v424_v22 }
 0x156   :  { %v544_v20 = vpop.f32.mrf.mxu2 }
 0x157   :  { %v545_v21 = vadd.f32 %v544_v20, %v531_v17 }
 0x159   :  { %v553_v23 = vadd.f32 %v759_v18, %v545_v21 }
 0x15b   :  { %555 = vst [vmem:[%s983_s9] sm:$0xff] %v553_v23 }
 0x15e   :  { %v546_v26 = vpop.f32.mrf.mxu2 }
 0x15f   :  { %v547_v27 = vadd.f32 %v546_v26, %v533_v25 }
 0x161   :  { %v554_v28 = vadd.f32 %v759_v18, %v547_v27 }
 0x163   :  { %556 = vst [vmem:[%s983_s9 + $0x8] sm:$0xff] %v554_v28 }

</bundles_post_ra>
